<compile_context>
chip_gen: v5e
topology: v5e:2x2
jax: 0.10.0
libtpu: 0.0.40
codegen_flags: <defaults>
</compile_context>

<pallas_src>
import functools

import jax
import jax.numpy as jnp
from jax.experimental import pallas as pl
from jax.experimental.pallas import tpu as pltpu

LN_EPS = 1e-5   # torch.nn.LayerNorm default
LANE = 128


def _round_up(n, m):
    return ((n + m - 1) // m) * m


# ---------------------------------------------------------------------------
# Kernel
# ---------------------------------------------------------------------------
def mlp_categorical_kernel(
    x_ref,      # (TB, d_in_p)   compute_dtype
    w1_ref,     # (d_in_p, h1_p) compute_dtype
    p1_ref,     # (8, h1_p)      f32   rows: 0=bias 1=gamma 2=beta
    w2_ref,     # (h1_p, h2_p)   compute_dtype
    p2_ref,     # (8, h2_p)      f32
    wl_ref,     # (h2_p, n_out_p) compute_dtype
    logp_ref,   # (TB, n_out_p)  f32
    *, h1, h2, n_out,
):
    def linear_ln_relu(h, w_ref, p_ref, h_true):
        # Linear (bias) -> LayerNorm(last dim, over the TRUE width) -> ReLU.
        z = jnp.dot(h, w_ref[...], preferred_element_type=jnp.float32)
        z = z + p_ref[0:1, :]                       # bias (zero on padded lanes)
        # Padded lanes of z are exactly zero, so plain sums give the true-width
        # statistics when divided by h_true; var via E[z^2] - mu^2.
        inv_n = 1.0 / h_true
        mu = jnp.sum(z, axis=-1, keepdims=True) * inv_n
        ex2 = jnp.sum(z * z, axis=-1, keepdims=True) * inv_n
        var = ex2 - mu * mu
        zn = (z - mu) * jax.lax.rsqrt(var + LN_EPS)
        zn = zn * p_ref[1:2, :] + p_ref[2:3, :]     # gamma/beta (zero on pads)
        return jnp.maximum(zn, 0.0)

    x = x_ref[...]
    h = linear_ln_relu(x, w1_ref, p1_ref, h1)
    h = linear_ln_relu(h.astype(w2_ref.dtype), w2_ref, p2_ref, h2)

    # logit_module: Linear without bias
    logits = jnp.dot(h.astype(wl_ref.dtype), wl_ref[...],
                     preferred_element_type=jnp.float32)

    # Mask padded logit lanes so they don't contribute to the normalization.
    n_out_p = logits.shape[-1]
    if n_out != n_out_p:
        lane_idx = jax.lax.broadcasted_iota(jnp.int32, logits.shape, 1)
        logits = jnp.where(lane_idx < n_out, logits, -jnp.inf)

    # Categorical(logits=...) normalization: logits - logsumexp(logits, -1)
    m = jnp.max(logits, axis=-1, keepdims=True)
    lse = m + jnp.log(jnp.sum(jnp.exp(logits - m), axis=-1, keepdims=True))
    logp_ref[...] = (logits - lse).astype(logp_ref.dtype)


# ---------------------------------------------------------------------------
# Parameter packing (pad to lane multiples, coalesce vectors, cast weights)
# ---------------------------------------------------------------------------
def pack_params(params, dims, compute_dtype=jnp.bfloat16):
    d_in, h1, h2, n_out = dims
    d_in_p, h1_p, h2_p, n_out_p = (_round_up(d, LANE) for d in dims)

    def pad2(a, rows, cols):
        return jnp.pad(a, ((0, rows - a.shape[0]), (0, cols - a.shape[1])))

    def pack_vecs(b, g, be, hp):
        v = jnp.concatenate([b, g, be], axis=0)          # (3, h)
        return jnp.pad(v, ((0, 8 - v.shape[0]), (0, hp - v.shape[1]))
                       ).astype(jnp.float32)             # (8, hp)

    return {
        "w1": pad2(params["w1"], d_in_p, h1_p).astype(compute_dtype),
        "p1": pack_vecs(params["b1"], params["g1"], params["be1"], h1_p),
        "w2": pad2(params["w2"], h1_p, h2_p).astype(compute_dtype),
        "p2": pack_vecs(params["b2"], params["g2"], params["be2"], h2_p),
        "wl": pad2(params["wl"], h2_p, n_out_p).astype(compute_dtype),
    }


# ---------------------------------------------------------------------------
# Forward wrapper
# ---------------------------------------------------------------------------
def mlp_categorical_forward(x, packed, dims, *, block_b=256,
                            compute_dtype=jnp.bfloat16):
    """Returns normalized logits (log-probs), shape [B, dims[-1]]."""
    d_in, h1, h2, n_out = dims
    d_in_p, h1_p = packed["w1"].shape
    h2_p = packed["w2"].shape[1]
    n_out_p = packed["wl"].shape[1]

    B = x.shape[0]
    itemsize = jnp.dtype(compute_dtype).itemsize
    sub = 8 if itemsize == 4 else 32 // itemsize          # 8 (f32) / 16 (bf16)
    tb = _round_up(min(block_b, _round_up(B, sub)), sub)  # batch tile
    b_pad = _round_up(B, tb)

    x_p = jnp.pad(x, ((0, b_pad - B), (0, d_in_p - d_in))).astype(compute_dtype)

    # VMEM budget: resident weights/packs + double-buffered x/out tiles +
    # f32 intermediates.  Cap comfortably below v7x's 64 MiB physical VMEM.
    bytes_w = itemsize * (d_in_p * h1_p + h1_p * h2_p + h2_p * n_out_p)
    bytes_p = 4 * 8 * (h1_p + h2_p)
    bytes_io = 2 * tb * (d_in_p * itemsize + n_out_p * 4)
    bytes_act = 4 * tb * (h1_p + h2_p + n_out_p)
    vmem_limit = int(min(48 << 20,
                         max(4 << 20, 2 * (bytes_w + bytes_p + bytes_io + bytes_act))))

    kernel = functools.partial(mlp_categorical_kernel, h1=h1, h2=h2, n_out=n_out)

    out = pl.pallas_call(
        kernel,
        out_shape=jax.ShapeDtypeStruct((b_pad, n_out_p), jnp.float32),
        grid=(b_pad // tb,),
        in_specs=[
            pl.BlockSpec((tb, d_in_p), lambda i: (i, 0)),       # x: streamed
            pl.BlockSpec((d_in_p, h1_p), lambda i: (0, 0)),     # weights: resident
            pl.BlockSpec((8, h1_p), lambda i: (0, 0)),
            pl.BlockSpec((h1_p, h2_p), lambda i: (0, 0)),
            pl.BlockSpec((8, h2_p), lambda i: (0, 0)),
            pl.BlockSpec((h2_p, n_out_p), lambda i: (0, 0)),
        ],
        out_specs=pl.BlockSpec((tb, n_out_p), lambda i: (i, 0)),
        compiler_params=pltpu.CompilerParams(
            dimension_semantics=("parallel",),
            vmem_limit_bytes=vmem_limit,
        ),
    )(x_p, packed["w1"], packed["p1"], packed["w2"], packed["p2"], packed["wl"])

    return out[:B, :n_out]


# ---------------------------------------------------------------------------
# Init + reference (plain JAX) for validation
# ---------------------------------------------------------------------------
def init_params(key, dims):
    """dims = [in, hidden1, hidden2, out]; weights stored pre-transposed [in, out]."""
    d_in, h1, h2, d_out = dims
    ks = jax.random.split(key, 5)

    def linear_w(k, fan_in, fan_out):
        bound = 1.0 / jnp.sqrt(fan_in)
        return jax.random.uniform(k, (fan_in, fan_out), jnp.float32, -bound, bound)

    def linear_b(k, fan_in, fan_out):
        bound = 1.0 / jnp.sqrt(fan_in)
        return jax.random.uniform(k, (1, fan_out), jnp.float32, -bound, bound)

    return {
        "w1": linear_w(ks[0], d_in, h1), "b1": linear_b(ks[1], d_in, h1),
        "g1": jnp.ones((1, h1), jnp.float32), "be1": jnp.zeros((1, h1), jnp.float32),
        "w2": linear_w(ks[2], h1, h2), "b2": linear_b(ks[3], h1, h2),
        "g2": jnp.ones((1, h2), jnp.float32), "be2": jnp.zeros((1, h2), jnp.float32),
        "wl": linear_w(ks[4], h2, d_out),   # bias=False
    }


def reference_forward(x, params, compute_dtype=jnp.bfloat16):
    """Plain-JAX reference with the same matmul compute dtype as the kernel."""
    def layer(h, w, b, g, be):
        z = jnp.dot(h.astype(compute_dtype), w.astype(compute_dtype),
                    preferred_element_type=jnp.float32) + b
        mu = jnp.mean(z, -1, keepdims=True)
        var = jnp.mean((z - mu) ** 2, -1, keepdims=True)
        zn = (z - mu) * jax.lax.rsqrt(var + LN_EPS) * g + be
        return jnp.maximum(zn, 0.0)

    h = layer(x, params["w1"], params["b1"], params["g1"], params["be1"])
    h = layer(h, params["w2"], params["b2"], params["g2"], params["be2"])
    logits = jnp.dot(h.astype(compute_dtype), params["wl"].astype(compute_dtype),
                     preferred_element_type=jnp.float32)
    return jax.nn.log_softmax(logits, axis=-1)


if __name__ == "__main__":
    # dims = [in_dim, hidden1, hidden2, out_dim]  (len >= 3 as required)
    dims = [16, 32, 32, 8]
    batch = 8

    key = jax.random.PRNGKey(0)
    k_x, k_p = jax.random.split(key)
    x = jax.random.normal(k_x, (batch, dims[0]), jnp.float32)
    params = init_params(k_p, dims)
    packed = pack_params(params, dims, compute_dtype=jnp.bfloat16)

    log_probs = mlp_categorical_forward(x, packed, dims,
                                        compute_dtype=jnp.bfloat16)
    log_probs = jax.block_until_ready(log_probs)

    ref = reference_forward(x, params, compute_dtype=jnp.bfloat16)
    assert log_probs.shape == (batch, dims[-1])
    err = jnp.max(jnp.abs(log_probs - ref))
    assert jnp.allclose(log_probs, ref, atol=1e-4, rtol=1e-4), f"max err {err}"
    # Categorical(logits=...) is represented by its normalized logits;
    # sampling itself has no deterministic forward output to reproduce.
    print("KERNEL_OK")
</pallas_src>

<mosaic_0001>
module attributes {stable_mosaic.version = 11 : i64} {
  func.func @mlp_categorical_kernel(%arg0: i32, %arg1: memref<16x128xbf16, #tpu.memory_space<vmem>>, %arg2: memref<128x128xbf16, #tpu.memory_space<vmem>>, %arg3: memref<8x128xf32, #tpu.memory_space<vmem>>, %arg4: memref<128x128xbf16, #tpu.memory_space<vmem>>, %arg5: memref<8x128xf32, #tpu.memory_space<vmem>>, %arg6: memref<128x128xbf16, #tpu.memory_space<vmem>>, %arg7: memref<16x128xf32, #tpu.memory_space<vmem>>) attributes {dimension_semantics = [#tpu.dimension_semantics<parallel>], iteration_bounds = array<i64: 1>, scalar_prefetch = 0 : i64, scratch_operands = 0 : i64, tpu.core_type = #tpu.core_type<tc>, window_params = [{transform_indices = @transform_0, window_bounds = array<i64: 16, 128>}, {pipeline_mode = #tpu.pipeline_mode<synchronous>, transform_indices = @transform_1, window_bounds = array<i64: 128, 128>}, {pipeline_mode = #tpu.pipeline_mode<synchronous>, transform_indices = @transform_2, window_bounds = array<i64: 8, 128>}, {pipeline_mode = #tpu.pipeline_mode<synchronous>, transform_indices = @transform_3, window_bounds = array<i64: 128, 128>}, {pipeline_mode = #tpu.pipeline_mode<synchronous>, transform_indices = @transform_4, window_bounds = array<i64: 8, 128>}, {pipeline_mode = #tpu.pipeline_mode<synchronous>, transform_indices = @transform_5, window_bounds = array<i64: 128, 128>}, {transform_indices = @transform_6, window_bounds = array<i64: 16, 128>}]} {
    %c0 = arith.constant 0 : index
    %c0_0 = arith.constant 0 : index
    %0 = vector.load %arg1[%c0, %c0_0] : memref<16x128xbf16, #tpu.memory_space<vmem>>, vector<16x128xbf16>
    %c0_1 = arith.constant 0 : index
    %c0_2 = arith.constant 0 : index
    %1 = vector.load %arg2[%c0_1, %c0_2] : memref<128x128xbf16, #tpu.memory_space<vmem>>, vector<128x128xbf16>
    %cst = arith.constant dense<0.000000e+00> : vector<16x128xf32>
    %2 = tpu.matmul %0, %1, %cst {dimension_numbers = #tpu.dot_dimension_numbers<[1], [0], [0], [1], [0, 0, 1, 1], [], []>} : vector<16x128xbf16>, vector<128x128xbf16>, vector<16x128xf32> -> vector<16x128xf32>
    %c0_3 = arith.constant 0 : index
    %c0_4 = arith.constant 0 : index
    %3 = vector.load %arg3[%c0_3, %c0_4] : memref<8x128xf32, #tpu.memory_space<vmem>>, vector<1x128xf32>
    %4 = vector.broadcast %3 : vector<1x128xf32> to vector<16x128xf32>
    %5 = arith.addf %2, %4 : vector<16x128xf32>
    %cst_5 = arith.constant dense<0.000000e+00> : vector<16xf32>
    %6 = vector.multi_reduction <add>, %5, %cst_5 [1] : vector<16x128xf32> to vector<16xf32>
    %7 = vector.shape_cast %6 : vector<16xf32> to vector<16x1xf32>
    %cst_6 = arith.constant 3.125000e-02 : f32
    %8 = vector.broadcast %cst_6 : f32 to vector<16x1xf32>
    %9 = arith.mulf %7, %8 : vector<16x1xf32>
    %10 = arith.mulf %5, %5 : vector<16x128xf32>
    %cst_7 = arith.constant dense<0.000000e+00> : vector<16xf32>
    %11 = vector.multi_reduction <add>, %10, %cst_7 [1] : vector<16x128xf32> to vector<16xf32>
    %12 = vector.shape_cast %11 : vector<16xf32> to vector<16x1xf32>
    %cst_8 = arith.constant 3.125000e-02 : f32
    %13 = vector.broadcast %cst_8 : f32 to vector<16x1xf32>
    %14 = arith.mulf %12, %13 : vector<16x1xf32>
    %15 = arith.mulf %9, %9 : vector<16x1xf32>
    %16 = arith.subf %14, %15 : vector<16x1xf32>
    %17 = vector.broadcast %9 : vector<16x1xf32> to vector<16x128xf32>
    %18 = arith.subf %5, %17 : vector<16x128xf32>
    %cst_9 = arith.constant 9.99999974E-6 : f32
    %19 = vector.broadcast %cst_9 : f32 to vector<16x1xf32>
    %20 = arith.addf %16, %19 : vector<16x1xf32>
    %21 = math.rsqrt %20 : vector<16x1xf32>
    %22 = vector.broadcast %21 : vector<16x1xf32> to vector<16x128xf32>
    %23 = arith.mulf %18, %22 : vector<16x128xf32>
    %c1 = arith.constant 1 : index
    %c0_10 = arith.constant 0 : index
    %24 = vector.load %arg3[%c1, %c0_10] : memref<8x128xf32, #tpu.memory_space<vmem>>, vector<1x128xf32>
    %25 = vector.broadcast %24 : vector<1x128xf32> to vector<16x128xf32>
    %26 = arith.mulf %23, %25 : vector<16x128xf32>
    %c2 = arith.constant 2 : index
    %c0_11 = arith.constant 0 : index
    %27 = vector.load %arg3[%c2, %c0_11] : memref<8x128xf32, #tpu.memory_space<vmem>>, vector<1x128xf32>
    %28 = vector.broadcast %27 : vector<1x128xf32> to vector<16x128xf32>
    %29 = arith.addf %26, %28 : vector<16x128xf32>
    %cst_12 = arith.constant 0.000000e+00 : f32
    %30 = vector.broadcast %cst_12 : f32 to vector<16x128xf32>
    %31 = arith.maximumf %29, %30 : vector<16x128xf32>
    %32 = arith.truncf %31 : vector<16x128xf32> to vector<16x128xbf16>
    %c0_13 = arith.constant 0 : index
    %c0_14 = arith.constant 0 : index
    %33 = vector.load %arg4[%c0_13, %c0_14] : memref<128x128xbf16, #tpu.memory_space<vmem>>, vector<128x128xbf16>
    %cst_15 = arith.constant dense<0.000000e+00> : vector<16x128xf32>
    %34 = tpu.matmul %32, %33, %cst_15 {dimension_numbers = #tpu.dot_dimension_numbers<[1], [0], [0], [1], [0, 0, 1, 1], [], []>} : vector<16x128xbf16>, vector<128x128xbf16>, vector<16x128xf32> -> vector<16x128xf32>
    %c0_16 = arith.constant 0 : index
    %c0_17 = arith.constant 0 : index
    %35 = vector.load %arg5[%c0_16, %c0_17] : memref<8x128xf32, #tpu.memory_space<vmem>>, vector<1x128xf32>
    %36 = vector.broadcast %35 : vector<1x128xf32> to vector<16x128xf32>
    %37 = arith.addf %34, %36 : vector<16x128xf32>
    %cst_18 = arith.constant dense<0.000000e+00> : vector<16xf32>
    %38 = vector.multi_reduction <add>, %37, %cst_18 [1] : vector<16x128xf32> to vector<16xf32>
    %39 = vector.shape_cast %38 : vector<16xf32> to vector<16x1xf32>
    %cst_19 = arith.constant 3.125000e-02 : f32
    %40 = vector.broadcast %cst_19 : f32 to vector<16x1xf32>
    %41 = arith.mulf %39, %40 : vector<16x1xf32>
    %42 = arith.mulf %37, %37 : vector<16x128xf32>
    %cst_20 = arith.constant dense<0.000000e+00> : vector<16xf32>
    %43 = vector.multi_reduction <add>, %42, %cst_20 [1] : vector<16x128xf32> to vector<16xf32>
    %44 = vector.shape_cast %43 : vector<16xf32> to vector<16x1xf32>
    %cst_21 = arith.constant 3.125000e-02 : f32
    %45 = vector.broadcast %cst_21 : f32 to vector<16x1xf32>
    %46 = arith.mulf %44, %45 : vector<16x1xf32>
    %47 = arith.mulf %41, %41 : vector<16x1xf32>
    %48 = arith.subf %46, %47 : vector<16x1xf32>
    %49 = vector.broadcast %41 : vector<16x1xf32> to vector<16x128xf32>
    %50 = arith.subf %37, %49 : vector<16x128xf32>
    %cst_22 = arith.constant 9.99999974E-6 : f32
    %51 = vector.broadcast %cst_22 : f32 to vector<16x1xf32>
    %52 = arith.addf %48, %51 : vector<16x1xf32>
    %53 = math.rsqrt %52 : vector<16x1xf32>
    %54 = vector.broadcast %53 : vector<16x1xf32> to vector<16x128xf32>
    %55 = arith.mulf %50, %54 : vector<16x128xf32>
    %c1_23 = arith.constant 1 : index
    %c0_24 = arith.constant 0 : index
    %56 = vector.load %arg5[%c1_23, %c0_24] : memref<8x128xf32, #tpu.memory_space<vmem>>, vector<1x128xf32>
    %57 = vector.broadcast %56 : vector<1x128xf32> to vector<16x128xf32>
    %58 = arith.mulf %55, %57 : vector<16x128xf32>
    %c2_25 = arith.constant 2 : index
    %c0_26 = arith.constant 0 : index
    %59 = vector.load %arg5[%c2_25, %c0_26] : memref<8x128xf32, #tpu.memory_space<vmem>>, vector<1x128xf32>
    %60 = vector.broadcast %59 : vector<1x128xf32> to vector<16x128xf32>
    %61 = arith.addf %58, %60 : vector<16x128xf32>
    %cst_27 = arith.constant 0.000000e+00 : f32
    %62 = vector.broadcast %cst_27 : f32 to vector<16x128xf32>
    %63 = arith.maximumf %61, %62 : vector<16x128xf32>
    %64 = arith.truncf %63 : vector<16x128xf32> to vector<16x128xbf16>
    %c0_28 = arith.constant 0 : index
    %c0_29 = arith.constant 0 : index
    %65 = vector.load %arg6[%c0_28, %c0_29] : memref<128x128xbf16, #tpu.memory_space<vmem>>, vector<128x128xbf16>
    %cst_30 = arith.constant dense<0.000000e+00> : vector<16x128xf32>
    %66 = tpu.matmul %64, %65, %cst_30 {dimension_numbers = #tpu.dot_dimension_numbers<[1], [0], [0], [1], [0, 0, 1, 1], [], []>} : vector<16x128xbf16>, vector<128x128xbf16>, vector<16x128xf32> -> vector<16x128xf32>
    %67 = tpu.iota {dimensions = array<i32: 1>} : vector<16x128xi32>
    %c8_i32 = arith.constant 8 : i32
    %68 = vector.broadcast %c8_i32 : i32 to vector<16x128xi32>
    %69 = arith.cmpi slt, %67, %68 : vector<16x128xi32>
    %cst_31 = arith.constant 0xFF800000 : f32
    %70 = vector.broadcast %cst_31 : f32 to vector<16x128xf32>
    %71 = arith.select %69, %66, %70 : vector<16x128xi1>, vector<16x128xf32>
    %cst_32 = arith.constant dense<0xFF800000> : vector<16xf32>
    %72 = vector.multi_reduction <maximumf>, %71, %cst_32 [1] : vector<16x128xf32> to vector<16xf32>
    %73 = vector.shape_cast %72 : vector<16xf32> to vector<16x1xf32>
    %74 = vector.broadcast %73 : vector<16x1xf32> to vector<16x128xf32>
    %75 = arith.subf %71, %74 : vector<16x128xf32>
    %76 = math.exp %75 : vector<16x128xf32>
    %cst_33 = arith.constant dense<0.000000e+00> : vector<16xf32>
    %77 = vector.multi_reduction <add>, %76, %cst_33 [1] : vector<16x128xf32> to vector<16xf32>
    %78 = vector.shape_cast %77 : vector<16xf32> to vector<16x1xf32>
    %79 = math.log %78 : vector<16x1xf32>
    %80 = arith.addf %73, %79 : vector<16x1xf32>
    %81 = vector.broadcast %80 : vector<16x1xf32> to vector<16x128xf32>
    %82 = arith.subf %71, %81 : vector<16x128xf32>
    %c0_34 = arith.constant 0 : index
    %c0_35 = arith.constant 0 : index
    %83 = vector.load %arg7[%c0_34, %c0_35] : memref<16x128xf32, #tpu.memory_space<vmem>>, vector<16x128xf32>
    tpu.vector_store %arg7[%c0_34, %c0_35], %82 {strides = array<i32>} : memref<16x128xf32, #tpu.memory_space<vmem>>, vector<16x128xf32>,
    return
  }
  func.func @transform_0(%arg0: i32) -> (i32, i32) {
    %c0_i32 = arith.constant 0 : i32
    %c0_i32_0 = arith.constant 0 : i32
    return %arg0, %c0_i32 : i32, i32
  }
  func.func @transform_1(%arg0: i32) -> (i32, i32) {
    %c0_i32 = arith.constant 0 : i32
    %c0_i32_0 = arith.constant 0 : i32
    %c0_i32_1 = arith.constant 0 : i32
    return %c0_i32, %c0_i32_0 : i32, i32
  }
  func.func @transform_2(%arg0: i32) -> (i32, i32) {
    %c0_i32 = arith.constant 0 : i32
    %c0_i32_0 = arith.constant 0 : i32
    %c0_i32_1 = arith.constant 0 : i32
    return %c0_i32, %c0_i32_0 : i32, i32
  }
  func.func @transform_3(%arg0: i32) -> (i32, i32) {
    %c0_i32 = arith.constant 0 : i32
    %c0_i32_0 = arith.constant 0 : i32
    %c0_i32_1 = arith.constant 0 : i32
    return %c0_i32, %c0_i32_0 : i32, i32
  }
  func.func @transform_4(%arg0: i32) -> (i32, i32) {
    %c0_i32 = arith.constant 0 : i32
    %c0_i32_0 = arith.constant 0 : i32
    %c0_i32_1 = arith.constant 0 : i32
    return %c0_i32, %c0_i32_0 : i32, i32
  }
  func.func @transform_5(%arg0: i32) -> (i32, i32) {
    %c0_i32 = arith.constant 0 : i32
    %c0_i32_0 = arith.constant 0 : i32
    %c0_i32_1 = arith.constant 0 : i32
    return %c0_i32, %c0_i32_0 : i32, i32
  }
  func.func @transform_6(%arg0: i32) -> (i32, i32) {
    %c0_i32 = arith.constant 0 : i32
    %c0_i32_0 = arith.constant 0 : i32
    return %arg0, %c0_i32 : i32, i32
  }
}

</mosaic_0001>

<bundles_post_ra>
// kernel: tpu_custom_call.1
= control target key start
LH: loop header
LB: loop body
LE: loop exit
PB: predicated region body
PF: predicated region fallthrough
CT: control target
= control target key end

     0   :  { %11 = vsyncpa [#allocation3], 0  ;;  %s948_s0 = inlined_call_operand.hbm [shape: bf16[16,128], index: 0, kind: input, shape index: {}]   ;;  %s949_s1 = inlined_call_operand.hbm [shape: bf16[128,128], index: 1, kind: input, shape index: {}]   ;;  %s950_s2 = inlined_call_operand.hbm [shape: f32[8,128], index: 2, kind: input, shape index: {}]   ;;  %s951_s3 = inlined_call_operand.hbm [shape: bf16[128,128], index: 3, kind: input, shape index: {}]   ;;  %s952_s4 = inlined_call_operand.hbm [shape: f32[8,128], index: 4, kind: input, shape index: {}]   ;;  %s953_s5 = inlined_call_operand.hbm [shape: bf16[128,128], index: 5, kind: input, shape index: {}]   ;;  %s954_s6 = inlined_call_operand.hbm [shape: f32[16,128], index: 6, kind: output, shape index: {}]  }
   0x1   :  { %12 = vsyncpa [#allocation6], 0 }
   0x2   :  { %13 = vsyncpa [#allocation9], 0 }
   0x3   :  { %14 = vsyncpa [#allocation12], 0 }
   0x4   :  { %15 = vsyncpa [#allocation4], 0  ;;  %s33_s23 = sshll.u32 %s949_s1, 4  ;;  %s857_s24 = smov [#allocation5]   ;;  %s34_s23 = int_to_ptr.hbm [resolvable:$true] %s33_s23 }
   0x5   :  { %s35_s25 = sshll.u32 %s857_s24, 4  ;;  %s57_s28 = sshll.u32 %s951_s3, 4  ;;  %s36_s25 = int_to_ptr.vmem [resolvable:$true] %s35_s25  ;;  %s58_s28 = int_to_ptr.hbm [resolvable:$true] %s57_s28 }
   0x6   :  { %s858_s29 = smov 64   ;;  %s859_s30 = smov 4  }
   0x7   :  { %41 = dma.hbm_to_vmem [thread:$0]  %s34_s23, 1024, %s36_s25, [#allocation6], %s858_s29, %s858_s29, %s859_s30  }
   0x8   :  { %s860_s7 = smov [#allocation8]   ;;  %s20_s1 = sshll.u32 %s948_s0, 4  ;;  %s21_s1 = int_to_ptr.hbm [resolvable:$true] %s20_s1 }
   0x9   :  { %s59_s8 = sshll.u32 %s860_s7, 4  ;;  %s47_s12 = sshll.u32 %s950_s2, 4  ;;  %s60_s8 = int_to_ptr.vmem [resolvable:$true] %s59_s8  ;;  %s48_s12 = int_to_ptr.hbm [resolvable:$true] %s47_s12 }
   0xa   :  { %65 = dma.hbm_to_vmem [thread:$0]  %s58_s28, 1024, %s60_s8, [#allocation9], %s858_s29, %s858_s29, %s859_s30  }
   0xb   :  { %s861_s13 = smov [#allocation2]   ;;  %s862_s15 = smov [#allocation7]  }
   0xc   :  { %s22_s14 = sshll.u32 %s861_s13, 4  ;;  %s49_s0 = sshll.u32 %s862_s15, 4  ;;  %s23_s14 = int_to_ptr.vmem [resolvable:$true] %s22_s14  ;;  %s50_s0 = int_to_ptr.vmem [resolvable:$true] %s49_s0 }
   0xd   :  { %28 = dma.hbm_to_vmem [thread:$0]  %s21_s1, 128, %s23_s14, [#allocation3], %s858_s29, %s858_s29, %s859_s30  }
   0xe   :  { %s71_s18 = sshll.u32 %s952_s4, 4  ;;  %s81_s2 = sshll.u32 %s953_s5, 4  ;;  %s72_s18 = int_to_ptr.hbm [resolvable:$true] %s71_s18  ;;  %s82_s2 = int_to_ptr.hbm [resolvable:$true] %s81_s2 }
   0xf   :  { %52 = dma.hbm_to_vmem [thread:$0]  %s48_s12, 128, %s50_s0, [#allocation6]  }
  0x10   :  { %s863_s21 = smov [#allocation10]   ;;  %s864_s23 = smov [#allocation11]  }
  0x11   :  { %s73_s22 = sshll.u32 %s863_s21, 4  ;;  %s83_s24 = sshll.u32 %s864_s23, 4  ;;  %s74_s22 = int_to_ptr.vmem [resolvable:$true] %s73_s22  ;;  %s84_s24 = int_to_ptr.vmem [resolvable:$true] %s83_s24 }
  0x12   :  { %76 = dma.hbm_to_vmem [thread:$0]  %s72_s18, 128, %s74_s22, [#allocation9]  }
  0x13   :  { %89 = dma.hbm_to_vmem [thread:$0]  %s82_s2, 1024, %s84_s24, [#allocation12], %s858_s29, %s858_s29, %s859_s30  }
  0x14   :  { %847 = dma.done.wait [#allocation3], 128  }
  0x15   :  { %848 = vsyncadd [#allocation3], 4294967168 }
  0x16   :  { %849 = dma.done.wait [#allocation6], 1152  }
  0x17   :  { %850 = vsyncadd [#allocation6], 4294966144 }
  0x18   :  { %851 = dma.done.wait [#allocation9], 1152  }
  0x19   :  { %852 = vsyncadd [#allocation9], 4294966144 }
  0x1a   :  { %853 = dma.done.wait [#allocation12], 1024  }
  0x1b   :  { %854 = vsyncadd [#allocation12], 4294966272  ;;  %v629_v0 = vld [vmem:[#allocation5 + $0x38] sm:$0xff]  ;;  %v628_v1 = vld [vmem:[#allocation5 + $0x30] sm:$0xff]  ;;  %s865_s4 = smov [#allocation13]   ;;  %s505_s27 = sshll.u32 %s954_s6, 4  ;;  %s506_s27 = int_to_ptr.hbm [resolvable:$true] %s505_s27 }
  0x1c   :  { %188 = vmatpush.bf16.msra.mxu0 %v629_v0  ;;  %v627_v2 = vld [vmem:[#allocation5 + $0x28] sm:$0xff]  ;;  %v626_v3 = vld [vmem:[#allocation5 + $0x20] sm:$0xff]  ;;  %v625_v4 = vld [vmem:[#allocation5 + $0x18] sm:$0xff]  ;;  %s503_s5 = sshll.u32 %s865_s4, 4  ;;  %s866_s28 = smov 128   ;;  %s504_s5 = int_to_ptr.vmem [resolvable:$true] %s503_s5 }
  0x1d   :  { %v624_v5 = vld [vmem:[#allocation5 + $0x10] sm:$0xff]  ;;  %v623_v6 = vld [vmem:[#allocation5 + $0x8] sm:$0xff]  ;;  %v622_v7 = vld [vmem:[#allocation5] sm:$0xff]  ;;  %s867_s29 = smov 8  }
  0x1e   :  { %v621_v8 = vld [vmem:[#allocation2] sm:$0xff]  ;;  %v657_v9 = vld [vmem:[#allocation7] ss:$0 sm:$0xff]  ;;  %v635_v18 = vld [vmem:[#allocation8 + $0x28] sm:$0xff] }
  0x1f   :  { %v637_v16 = vld [vmem:[#allocation8 + $0x38] sm:$0xff]  ;;  %v636_v17 = vld [vmem:[#allocation8 + $0x30] sm:$0xff]  ;;  %v634_v19 = vld [vmem:[#allocation8 + $0x20] sm:$0xff] }
  0x20   :  { %189 = vmatpush.bf16.msra.mxu0 %v628_v1  ;;  %323 = vmatpush.bf16.msra.mxu1 %v637_v16  ;;  %v633_v20 = vld [vmem:[#allocation8 + $0x18] sm:$0xff]  ;;  %v632_v22 = vld [vmem:[#allocation8 + $0x10] sm:$0xff]  ;;  %v631_v25 = vld [vmem:[#allocation8 + $0x8] sm:$0xff] }
  0x21   :  { %v630_v29 = vld [vmem:[#allocation8] sm:$0xff]  ;;  %v658_v51 = vld [vmem:[#allocation7 + $0x1] ss:$0 sm:$0xff]  ;;  %v659_v56 = vld [vmem:[#allocation7 + $0x2] ss:$0 sm:$0xff] }
  0x22   :  { %v660_v1 = vld [vmem:[#allocation10] ss:$0 sm:$0xff] }
  0x24   :  { %190 = vmatpush.bf16.msra.mxu0 %v627_v2  ;;  %324 = vmatpush.bf16.msra.mxu1 %v636_v17  ;;  %v639_v17 = vld [vmem:[#allocation11 + $0x8] sm:$0xff] }
  0x28   :  { %191 = vmatpush.bf16.msra.mxu0 %v626_v3  ;;  %325 = vmatpush.bf16.msra.mxu1 %v635_v18 }
  0x2c   :  { %192 = vmatpush.bf16.msra.mxu0 %v625_v4  ;;  %326 = vmatpush.bf16.msra.mxu1 %v634_v19 }
  0x30   :  { %193 = vmatpush.bf16.msra.mxu0 %v624_v5  ;;  %327 = vmatpush.bf16.msra.mxu1 %v633_v20 }
  0x34   :  { %194 = vmatpush.bf16.msra.mxu0 %v623_v6  ;;  %328 = vmatpush.bf16.msra.mxu1 %v632_v22 }
  0x38   :  { %195 = vmatpush.bf16.msra.mxu0 %v622_v7  ;;  %329 = vmatpush.bf16.msra.mxu1 %v631_v25 }
  0x3b   :  { %196 = vmatmul.bf16.vlgmr.msra.gmra.mxu0 %v621_v8  ;;  %v645_v8 = vld [vmem:[#allocation11 + $0x38] sm:$0xff] }
  0x3c   :  { %330 = vmatpush.bf16.msra.mxu1 %v630_v29  ;;  %456 = vmatpush.bf16.msra.mxu2 %v645_v8 }
  0xb8   :  { %v197_v10 = vpop.f32.mrf.mxu0 }
  0xb9   :  { %v198_v11 = vadd.f32 %v657_v9, %v197_v10  ;;  %v643_v10 = vld [vmem:[#allocation11 + $0x28] sm:$0xff] }
  0xbb   :  { %202 = vadd.xlane.f32.xlu0 %v198_v11  ;;  %v208_v12 = vmul.f32 %v198_v11, %v198_v11 }
  0xbd   :  { %210 = vadd.xlane.f32.xlu1 %v208_v12  ;;  %v641_v12 = vld [vmem:[#allocation11 + $0x18] sm:$0xff] }
  0xc0   :  { %v199_v13 = vpop.f32.mrf.mxu0 }
  0xc1   :  { %v933_v14 = vadd.f32 %v657_v9, %v199_v13  ;;  %v644_v9 = vld [vmem:[#allocation11 + $0x30] sm:$0xff] }
  0xc2   :  { %457 = vmatpush.bf16.msra.mxu2 %v644_v9 }
  0xc3   :  { %204 = vadd.xlane.f32.xlu0 %v933_v14  ;;  %v209_v15 = vmul.f32 %v933_v14, %v933_v14 }
  0xc5   :  { %212 = vadd.xlane.f32.xlu1 %v209_v15 }
  0xc6   :  { %458 = vmatpush.bf16.msra.mxu2 %v643_v10 }
 0x12e   :  { %v203_v21 = vpop.xlane.xlu0 %202 }
 0x12f   :  { %v206_v23 = vmul.f32 0.03125, %v203_v21  ;;  %v638_v21 = vld [vmem:[#allocation11] sm:$0xff] }
 0x130   :  { %v211_v24 = vpop.xlane.xlu1 %210 }
 0x131   :  { %v216_v26 = vmul.f32 %v206_v23, %v206_v23  ;;  %v214_v27 = vmul.f32 0.03125, %v211_v24  ;;  %v220_v48 = vsub.f32 %v198_v11, %v206_v23  ;;  %v642_v11 = vld [vmem:[#allocation11 + $0x20] sm:$0xff] }
 0x132   :  { %459 = vmatpush.bf16.msra.mxu2 %v642_v11 }
 0x133   :  { %v218_v28 = vsub.f32 %v214_v27, %v216_v26 }
 0x135   :  { %v222_v30 = vadd.f32 1e-05, %v218_v28 }
 0x136   :  { %v205_v31 = vpop.xlane.xlu0 %204  ;;  %460 = vmatpush.bf16.msra.mxu2 %v641_v12 }
 0x137   :  { %663 = vrsqrt.f32 %v222_v30  ;;  %v207_v32 = vmul.f32 0.03125, %v205_v31  ;;  %vm230_vm1 = vweird.f32 %v222_v30 }
 0x138   :  { %v213_v33 = vpop.xlane.xlu1 %212 }
 0x139   :  { %v217_v34 = vmul.f32 %v207_v32, %v207_v32  ;;  %v215_v35 = vmul.f32 0.03125, %v213_v33  ;;  %v221_v54 = vsub.f32 %v933_v14, %v207_v32  ;;  %v640_v14 = vld [vmem:[#allocation11 + $0x10] sm:$0xff] }
 0x13a   :  { %461 = vmatpush.bf16.msra.mxu2 %v640_v14 }
 0x13b   :  { %v219_v36 = vsub.f32 %v215_v35, %v217_v34 }
 0x13d   :  { %v664_v37 = vpop.eup %663  ;;  %v223_v38 = vadd.f32 1e-05, %v219_v36 }
 0x13e   :  { %v225_v39 = vmul.f32 %v664_v37, %v222_v30  ;;  %vm231_vm0 = vweird.f32 %v664_v37  ;;  %462 = vmatpush.bf16.msra.mxu2 %v639_v17 }
 0x13f   :  { %665 = vrsqrt.f32 %v223_v38  ;;  %vm232_vm2 = vmor %vm230_vm1, %vm231_vm0  ;;  %vm240_vm4 = vweird.f32 %v223_v38 }
 0x140   :  { %v226_v40 = vmul.f32 %v664_v37, %v225_v39 }
 0x142   :  { %v227_v41 = vmul.f32 0.5, %v226_v40  ;;  %463 = vmatpush.bf16.msra.mxu2 %v638_v21 }
 0x144   :  { %v228_v42 = vsub.f32 1.5, %v227_v41 }
 0x145   :  { %v666_v43 = vpop.eup %665 }
 0x146   :  { %v229_v44 = vmul.f32 %v664_v37, %v228_v42  ;;  %v235_v45 = vmul.f32 %v666_v43, %v223_v38  ;;  %vm241_vm3 = vweird.f32 %v666_v43 }
 0x147   :  { %vm242_vm5 = vmor %vm240_vm4, %vm241_vm3 }
 0x148   :  { %v236_v46 = vmul.f32 %v666_v43, %v235_v45  ;;  %v233_v47 = vsel %vm232_vm2, %v664_v37, %v229_v44 }
 0x149   :  { %v244_v50 = vmul.f32 %v233_v47, %v220_v48  ;;  %v662_v48 = vld [vmem:[#allocation10 + $0x2] ss:$0 sm:$0xff] }
 0x14a   :  { %v237_v49 = vmul.f32 0.5, %v236_v46 }
 0x14b   :  { %v248_v55 = vmul.f32 %v658_v51, %v244_v50 }
 0x14c   :  { %v238_v52 = vsub.f32 1.5, %v237_v49 }
 0x14d   :  { %v252_v60 = vadd.f32 %v659_v56, %v248_v55 }
 0x14e   :  { %v239_v53 = vmul.f32 %v666_v43, %v238_v52 }
 0x14f   :  { %v254_v62 = vmax.f32 %v252_v60, 0.0 }
 0x150   :  { %v243_v57 = vsel %vm242_vm5, %v666_v43, %v239_v53  ;;  %v661_v43 = vld [vmem:[#allocation10 + $0x1] ss:$0 sm:$0xff] }
 0x151   :  { %v245_v58 = vmul.f32 %v243_v57, %v221_v54  ;;  %v470_v57 = vlaneseq }
 0x153   :  { %v249_v59 = vmul.f32 %v658_v51, %v245_v58  ;;  %v471_v58 = vand.u32 127, %v470_v57 }
 0x155   :  { %v253_v61 = vadd.f32 %v659_v56, %v249_v59  ;;  %vm472_vm12 = vcmp.lt.s32.totalorder %v471_v58, 8 }
 0x157   :  { %v255_v63 = vmax.f32 %v253_v61, 0.0 }
 0x159   :  { %v256_v0 = vpack.c.bf16 %v255_v63, %v254_v62 }
 0x15b   :  { %331 = vmatmul.bf16.vlgmr.msra.gmra.mxu1 %v256_v0 }
 0x1d8   :  { %v332_v2 = vpop.f32.mrf.mxu1 }
 0x1d9   :  { %v333_v3 = vadd.f32 %v660_v1, %v332_v2 }
 0x1db   :  { %337 = vadd.xlane.f32.xlu2 %v333_v3  ;;  %v343_v4 = vmul.f32 %v333_v3, %v333_v3 }
 0x1dd   :  { %345 = vadd.xlane.f32.xlu0 %v343_v4 }
 0x1e0   :  { %v334_v5 = vpop.f32.mrf.mxu1 }
 0x1e1   :  { %v939_v6 = vadd.f32 %v660_v1, %v334_v5 }
 0x1e3   :  { %339 = vadd.xlane.f32.xlu2 %v939_v6  ;;  %v344_v7 = vmul.f32 %v939_v6, %v939_v6 }
 0x1e5   :  { %347 = vadd.xlane.f32.xlu1 %v344_v7 }
 0x24e   :  { %v338_v13 = vpop.xlane.xlu2 %337 }
 0x24f   :  { %v341_v15 = vmul.f32 0.03125, %v338_v13 }
 0x250   :  { %v346_v16 = vpop.xlane.xlu0 %345 }
 0x251   :  { %v351_v18 = vmul.f32 %v341_v15, %v341_v15  ;;  %v349_v19 = vmul.f32 0.03125, %v346_v16  ;;  %v355_v40 = vsub.f32 %v333_v3, %v341_v15 }
 0x253   :  { %v353_v20 = vsub.f32 %v349_v19, %v351_v18 }
 0x255   :  { %v357_v22 = vadd.f32 1e-05, %v353_v20 }
 0x256   :  { %v340_v23 = vpop.xlane.xlu2 %339 }
 0x257   :  { %667 = vrsqrt.f32 %v357_v22  ;;  %v342_v24 = vmul.f32 0.03125, %v340_v23  ;;  %vm365_vm7 = vweird.f32 %v357_v22 }
 0x258   :  { %v348_v25 = vpop.xlane.xlu1 %347 }
 0x259   :  { %v352_v26 = vmul.f32 %v342_v24, %v342_v24  ;;  %v350_v27 = vmul.f32 0.03125, %v348_v25  ;;  %v356_v46 = vsub.f32 %v939_v6, %v342_v24 }
 0x25b   :  { %v354_v28 = vsub.f32 %v350_v27, %v352_v26 }
 0x25d   :  { %v668_v29 = vpop.eup %667  ;;  %v358_v30 = vadd.f32 1e-05, %v354_v28 }
 0x25e   :  { %v360_v31 = vmul.f32 %v668_v29, %v357_v22  ;;  %vm366_vm6 = vweird.f32 %v668_v29 }
 0x25f   :  { %669 = vrsqrt.f32 %v358_v30  ;;  %vm367_vm8 = vmor %vm365_vm7, %vm366_vm6  ;;  %vm375_vm10 = vweird.f32 %v358_v30 }
 0x260   :  { %v361_v32 = vmul.f32 %v668_v29, %v360_v31 }
 0x262   :  { %v362_v33 = vmul.f32 0.5, %v361_v32 }
 0x264   :  { %v363_v34 = vsub.f32 1.5, %v362_v33 }
 0x265   :  { %v670_v35 = vpop.eup %669 }
 0x266   :  { %v364_v36 = vmul.f32 %v668_v29, %v363_v34  ;;  %v370_v37 = vmul.f32 %v670_v35, %v358_v30  ;;  %vm376_vm9 = vweird.f32 %v670_v35 }
 0x267   :  { %vm377_vm11 = vmor %vm375_vm10, %vm376_vm9 }
 0x268   :  { %v371_v38 = vmul.f32 %v670_v35, %v370_v37  ;;  %v368_v39 = vsel %vm367_vm8, %v668_v29, %v364_v36 }
 0x269   :  { %v379_v42 = vmul.f32 %v368_v39, %v355_v40 }
 0x26a   :  { %v372_v41 = vmul.f32 0.5, %v371_v38 }
 0x26b   :  { %v383_v47 = vmul.f32 %v661_v43, %v379_v42 }
 0x26c   :  { %v373_v44 = vsub.f32 1.5, %v372_v41 }
 0x26d   :  { %v387_v52 = vadd.f32 %v662_v48, %v383_v47 }
 0x26e   :  { %v374_v45 = vmul.f32 %v670_v35, %v373_v44 }
 0x26f   :  { %v389_v54 = vmax.f32 %v387_v52, 0.0 }
 0x270   :  { %v378_v49 = vsel %vm377_vm11, %v670_v35, %v374_v45 }
 0x271   :  { %v380_v50 = vmul.f32 %v378_v49, %v356_v46 }
 0x273   :  { %v384_v51 = vmul.f32 %v661_v43, %v380_v50 }
 0x275   :  { %v388_v53 = vadd.f32 %v662_v48, %v384_v51 }
 0x277   :  { %v390_v55 = vmax.f32 %v388_v53, 0.0 }
 0x279   :  { %v391_v56 = vpack.c.bf16 %v390_v55, %v389_v54 }
 0x27b   :  { %464 = vmatmul.bf16.vlgmr.msra.gmra.mxu2 %v391_v56 }
 0x2fe   :  { %v465_v59 = vpop.f32.mrf.mxu2 }
 0x2ff   :  { %v473_v60 = vsel %vm472_vm12, %v465_v59, -inf }
 0x300   :  { %475 = vmax.xlane.f32.xlu2 %v473_v60 }
 0x306   :  { %v467_v61 = vpop.f32.mrf.mxu2 }
 0x307   :  { %v474_v62 = vsel %vm472_vm12, %v467_v61, -inf }
 0x308   :  { %477 = vmax.xlane.f32.xlu0 %v474_v62 }
 0x373   :  { %v476_v63 = vpop.xlane.xlu2 %475 }
 0x374   :  { %v479_v0 = vsub.f32 %v473_v60, %v476_v63 }
 0x376   :  { %v481_v1 = vmul.f32 1.442695, %v479_v0 }
 0x378   :  { %671 = vpow2.f32 %v481_v1 }
 0x37b   :  { %v478_v2 = vpop.xlane.xlu0 %477 }
 0x37c   :  { %v480_v3 = vsub.f32 %v474_v62, %v478_v2 }
 0x37e   :  { %v672_v4 = vpop.eup %671  ;;  %v483_v5 = vmul.f32 1.442695, %v480_v3 }
 0x37f   :  { %485 = vadd.xlane.f32.xlu1 %v672_v4 }
 0x380   :  { %673 = vpow2.f32 %v483_v5 }
 0x386   :  { %v674_v6 = vpop.eup %673 }
 0x387   :  { %487 = vadd.xlane.f32.xlu2 %v674_v6 }
 0x3f2   :  { %v486_v7 = vpop.xlane.xlu1 %485 }
 0x3f3   :  { %675 = vlog2.f32 %v486_v7 }
 0x3f9   :  { %v676_v8 = vpop.eup %675 }
 0x3fa   :  { %v490_v9 = vmul.f32 0.6931472, %v676_v8  ;;  %v488_v10 = vpop.xlane.xlu2 %487 }
 0x3fb   :  { %677 = vlog2.f32 %v488_v10 }
 0x3fc   :  { %v493_v11 = vadd.f32 %v490_v9, %v476_v63 }
 0x3fe   :  { %v495_v12 = vsub.f32 %v473_v60, %v493_v11 }
 0x400   :  { %497 = vst [vmem:[#allocation13] sm:$0xff] %v495_v12 }
 0x401   :  { %v678_v13 = vpop.eup %677 }
 0x402   :  { %v492_v14 = vmul.f32 0.6931472, %v678_v13 }
 0x404   :  { %v494_v15 = vadd.f32 %v492_v14, %v478_v2 }
 0x406   :  { %v496_v16 = vsub.f32 %v474_v62, %v494_v15 }
 0x408   :  { %498 = vst [vmem:[#allocation13 + $0x8] sm:$0xff] %v496_v16 }
 0x409   :  { %511 = dma.vmem_to_hbm [thread:$0]  %s504_s5, 256, %s506_s27, [#allocation4], %s866_s28, %s866_s28, %s867_s29  }
 0x40a   :  { %855 = dma.done.wait [#allocation4], 256  }
 0x40b   :  { %856 = vsyncadd [#allocation4], 4294967040 }
 0x40c   :  { %516 = vsyncpa [#allocation3], 1 }
 0x40d   :  { %517 = vsyncpa [#allocation6], 1 }
 0x40e   :  { %518 = vsyncpa [#allocation9], 1 }
 0x40f   :  { %519 = vsyncpa [#allocation12], 1 }
 0x410   :  { %520 = vsyncpa [#allocation4], 1 }

</bundles_post_ra>
